<compile_context>
chip_gen: v7x
topology: tpu7x:2x2x1
jax: 0.10.0
libtpu: 0.0.40
codegen_flags: <defaults>
</compile_context>

<pallas_src>
import jax
import jax.numpy as jnp
import numpy as np
from jax.experimental import pallas as pl
from jax.experimental.pallas import tpu as pltpu

EPS = 1e-6
CUTOFF = 10.0

# ---- module dims (consistent with MessageModule __init__) ----
NODE_SCA, NODE_VEC = 16, 8
EDGE_SCA, EDGE_VEC = 16, 8
OUT_SCA, OUT_VEC = 16, 8
HID_SCA, HID_VEC = EDGE_SCA, EDGE_VEC            # hid = edge dims (per __init__)
NGL_HID = max(NODE_VEC, OUT_VEC)                 # node GVLinear hidden vec dim
EGL_HID = max(EDGE_VEC, HID_VEC)                 # edge GVLinear hidden vec dim
OGL_HID = max(OUT_VEC, OUT_VEC)                  # out  GVLinear hidden vec dim

TE = 512                                         # edge tile (lane axis, multiple of 128)
TN = 512                                         # node tile (lane axis, multiple of 128)

# original (PyTorch-style) parameter names, used by init_params / reference
PARAM_ORDER = [
    "nWv1", "nWv2", "nWs", "nWg", "nbg",
    "eWv1", "eWv2", "eWs", "eWg", "ebg", "eWd",
    "Wsca", "bsca", "We2n", "be2n", "Wn2e", "bn2e", "Wevn", "bevn",
    "oWv1", "oWv2", "oWs", "oWg", "obg",
]

# kernel-side (transposed / split / packed) parameter names
NODE_KP_ORDER = ["nWv1", "nWv2", "nWsv", "nWss", "nWg", "nbg"]
EDGE_KP_ORDER = ["eWv1", "eWv2", "eWsv", "eWss", "eWg", "eWd",
                 "Wes", "Wn2e", "Wevn",
                 "oWv1", "oWv2", "oWsv", "oWss", "oWg", "bias"]


def _round_up(x, m):
    return (x + m - 1) // m * m


# ----------------------------- in-kernel helpers -----------------------------
def _dot_bf16(W_T, x):
    """MXU matmul with bf16 operands, f32 accumulation. W_T: [Cout, Cin], x: [Cin, T]."""
    return jnp.dot(W_T.astype(jnp.bfloat16), x.astype(jnp.bfloat16),
                   preferred_element_type=jnp.float32)


def _vn_apply_t(v, W_T, b_col=None):
    """VNLinear in transposed layout. v: [3, Cin, T] -> [3, Cout, T].

    Each xyz dot is [Cout,Cin] @ [Cin,T] (N = T lane-dense); the jnp.stack only adds a
    new leading (untiled) axis, so no relayout is involved.
    """
    out = jnp.stack([_dot_bf16(W_T, v[k]) for k in range(3)], axis=0)
    if b_col is not None:
        out = out + b_col[None]                   # [Cout,1] broadcast over xyz & lanes
    return out


def _gvlinear_t(s, v, Wv1_T, Wv2_T, Wsv_T, Wss_T, Wg_T, bg_col):
    """GVLinear, transposed. s: [Cs_in, T], v: [3, Cv_in, T]."""
    v_inter = _vn_apply_t(v, Wv1_T)                               # [3, hid, T] f32
    vnorm = jnp.sqrt(v_inter[0] * v_inter[0]
                     + v_inter[1] * v_inter[1]
                     + v_inter[2] * v_inter[2])                   # [hid, T]
    # cat([vnorm, s]) @ Ws  ==  Ws[:hid]^T @ vnorm + Ws[hid:]^T @ s   (split in wrapper)
    out_s = _dot_bf16(Wsv_T, vnorm) + _dot_bf16(Wss_T, s)         # [Cs_out, T]
    out_v = _vn_apply_t(v_inter, Wv2_T)                           # [3, Cv_out, T]
    gate = jax.nn.sigmoid(_dot_bf16(Wg_T, out_s) + bg_col)        # [Cv_out, T]
    return out_s, gate[None] * out_v


def _vn_leaky_relu_t(v, Wd_T, slope=0.01):
    """VNLeakyReLU, transposed. v: [3, C, T]."""
    d = _vn_apply_t(v, Wd_T)                                      # [3, C, T]
    dot = v[0] * d[0] + v[1] * d[1] + v[2] * d[2]                 # [C, T]
    dns = d[0] * d[0] + d[1] * d[1] + d[2] * d[2]
    mask = (dot >= 0).astype(jnp.float32)
    inv = pl.reciprocal(dns + EPS, approx=True)                   # EUP slot
    proj = (dot * inv)[None] * d
    return slope * v + (1.0 - slope) * (mask[None] * v + (1.0 - mask)[None] * (v - proj))


# --------------------------------- kernels -----------------------------------
def node_kernel(s_ref, v_ref, Wv1, Wv2, Wsv, Wss, Wg, bg, out_s_ref, out_v_ref):
    out_s, out_v = _gvlinear_t(s_ref[...], v_ref[...],
                               Wv1[...], Wv2[...], Wsv[...], Wss[...], Wg[...], bg[...])
    out_s_ref[...] = out_s.astype(out_s_ref.dtype)
    out_v_ref[...] = out_v.astype(out_v_ref.dtype)


def message_kernel(
    ns_ref, nv_ref, es_ref, ev_ref,
    eWv1, eWv2, eWsv, eWss, eWg, eWd,
    Wes, Wn2e, Wevn,
    oWv1, oWv2, oWsv, oWss, oWg, bias,
    out_s_ref, out_v_ref,
):
    ns = ns_ref[...]            # [OUT_SCA, TE]   bf16 (node GVLinear out, gathered/edge)
    nv = nv_ref[...]            # [3, OUT_VEC, TE] bf16
    es_in = es_ref[...]         # [EDGE_SCA, TE]  bf16
    ev_in = ev_ref[...]         # [3, EDGE_VEC, TE] bf16

    b = bias[...]               # packed bias column [56, 1] f32 (sublane-aligned slices)
    b_ebg = b[0:8]
    b_es = b[8:32]              # [bsca(16) ; be2n(8)]
    b_n2e = b[32:40]
    b_evn = b[40:48]
    b_obg = b[48:56]

    # ---- edge_gvp = GVLinear + VNLeakyReLU(vec) + LeakyReLU(sca) ----
    es_l, ev_l = _gvlinear_t(es_in, ev_in, eWv1[...], eWv2[...],
                             eWsv[...], eWss[...], eWg[...], b_ebg)
    ev = _vn_leaky_relu_t(ev_l, eWd[...], 0.01)
    es = jnp.where(es_l >= 0, es_l, 0.01 * es_l)

    # ---- message mixing (sca_linear & e2n_linear share LHS `es`: fused dot) ----
    mix = _dot_bf16(Wes[...], es) + b_es                          # [OUT_SCA+OUT_VEC, TE]
    y_s = ns * mix[:OUT_SCA]                                      # [OUT_SCA, TE]
    y_nv = mix[OUT_SCA:][None] * nv                               # [3, OUT_VEC, TE]
    ev_lin = _vn_apply_t(ev, Wevn[...], b_evn)                    # edge_vnlinear (w/ bias)
    y_ev = (_dot_bf16(Wn2e[...], ns) + b_n2e)[None] * ev_lin
    y_v = y_nv + y_ev

    # ---- out_gvlienar ----
    out_s, out_v = _gvlinear_t(y_s, y_v, oWv1[...], oWv2[...],
                               oWsv[...], oWss[...], oWg[...], b_obg)
    out_s_ref[...] = out_s.astype(out_s_ref.dtype)
    out_v_ref[...] = out_v.astype(out_v_ref.dtype)


# --------------------------------- wrapper -----------------------------------
def _full_spec(shape):
    nd = len(shape)
    return pl.BlockSpec(shape, lambda i, _nd=nd: (0,) * _nd)


def _prep_params(p):
    """Transpose / split / pack the PyTorch-style params into kernel-ready f32 arrays."""
    t = lambda w: jnp.asarray(w, jnp.float32).T           # [Cin,Cout] -> [Cout,Cin]
    col = lambda b: jnp.asarray(b, jnp.float32).reshape(-1, 1)   # [1,C] -> [C,1]
    kp = {
        # node GVLinear
        "nWv1": t(p["nWv1"]), "nWv2": t(p["nWv2"]),
        "nWsv": t(p["nWs"][:NGL_HID]), "nWss": t(p["nWs"][NGL_HID:]),
        "nWg": t(p["nWg"]), "nbg": col(p["nbg"]),
        # edge GVPerceptronVN
        "eWv1": t(p["eWv1"]), "eWv2": t(p["eWv2"]),
        "eWsv": t(p["eWs"][:EGL_HID]), "eWss": t(p["eWs"][EGL_HID:]),
        "eWg": t(p["eWg"]), "eWd": t(p["eWd"]),
        # mixing: fuse sca_linear & e2n_linear (same LHS `es`)
        "Wes": jnp.concatenate([t(p["Wsca"]), t(p["We2n"])], axis=0),   # [24, 16]
        "Wn2e": t(p["Wn2e"]), "Wevn": t(p["Wevn"]),
        # out GVLinear
        "oWv1": t(p["oWv1"]), "oWv2": t(p["oWv2"]),
        "oWsv": t(p["oWs"][:OGL_HID]), "oWss": t(p["oWs"][OGL_HID:]),
        "oWg": t(p["oWg"]),
        # packed bias column: [ebg(8); bsca(16); be2n(8); bn2e(8); bevn(8); obg(8)]
        "bias": jnp.concatenate([col(p["ebg"]), col(p["bsca"]), col(p["be2n"]),
                                 col(p["bn2e"]), col(p["bevn"]), col(p["obg"])], axis=0),
    }
    return kp


def _node_gvlinear_pallas(kp, node_scalar, node_vector):
    """Run the node GVLinear once per node; outputs in transposed bf16 layout."""
    N = node_scalar.shape[0]
    Np = _round_up(max(N, TN), TN)
    s_t = jnp.pad(node_scalar, ((0, Np - N), (0, 0))).T.astype(jnp.bfloat16)          # [C, Np]
    v_t = jnp.transpose(jnp.pad(node_vector, ((0, 0), (0, Np - N), (0, 0))),
                        (0, 2, 1)).astype(jnp.bfloat16)                               # [3, C, Np]
    weights = [kp[k] for k in NODE_KP_ORDER]

    in_specs = ([pl.BlockSpec((NODE_SCA, TN), lambda i: (0, i)),
                 pl.BlockSpec((3, NODE_VEC, TN), lambda i: (0, 0, i))]
                + [_full_spec(w.shape) for w in weights])
    out_specs = [pl.BlockSpec((OUT_SCA, TN), lambda i: (0, i)),
                 pl.BlockSpec((3, OUT_VEC, TN), lambda i: (0, 0, i))]
    out_shape = (jax.ShapeDtypeStruct((OUT_SCA, Np), jnp.bfloat16),
                 jax.ShapeDtypeStruct((3, OUT_VEC, Np), jnp.bfloat16))

    return pl.pallas_call(
        node_kernel,
        grid=(Np // TN,),
        in_specs=in_specs,
        out_specs=out_specs,
        out_shape=out_shape,
        compiler_params=pltpu.CompilerParams(dimension_semantics=("parallel",)),
    )(s_t, v_t, *weights)


def message_module_pallas(params, node_scalar, node_vector, edge_scalar, edge_vector,
                          edge_index, dist_ij=None, annealing=False):
    E = edge_index.shape[0]
    Ep = _round_up(max(E, TE), TE)
    kp = _prep_params(params)

    # (1) node GVLinear once per node, then gather its OUTPUTS per edge (row-wise op
    #     commutes with the gather, so this is mathematically identical).
    ns_all, nv_all = _node_gvlinear_pallas(kp, node_scalar, node_vector)
    eidx = jnp.pad(edge_index, (0, Ep - E)).astype(jnp.int32)
    ns_g = ns_all[:, eidx]                       # [OUT_SCA, Ep]     bf16
    nv_g = nv_all[:, :, eidx]                    # [3, OUT_VEC, Ep]  bf16

    # (2) edge features -> padded, transposed (lane-dense), bf16.
    #     (In a full pipeline the upstream module would emit this layout directly.)
    es_t = jnp.pad(edge_scalar, ((0, Ep - E), (0, 0))).T.astype(jnp.bfloat16)
    ev_t = jnp.transpose(jnp.pad(edge_vector, ((0, 0), (0, Ep - E), (0, 0))),
                         (0, 2, 1)).astype(jnp.bfloat16)

    edge_weights = [kp[k] for k in EDGE_KP_ORDER]
    in_specs = ([pl.BlockSpec((OUT_SCA, TE), lambda i: (0, i)),
                 pl.BlockSpec((3, OUT_VEC, TE), lambda i: (0, 0, i)),
                 pl.BlockSpec((EDGE_SCA, TE), lambda i: (0, i)),
                 pl.BlockSpec((3, EDGE_VEC, TE), lambda i: (0, 0, i))]
                + [_full_spec(w.shape) for w in edge_weights])
    out_specs = [pl.BlockSpec((OUT_SCA, TE), lambda i: (0, i)),
                 pl.BlockSpec((3, OUT_VEC, TE), lambda i: (0, 0, i))]
    out_shape = (jax.ShapeDtypeStruct((OUT_SCA, Ep), jnp.float32),
                 jax.ShapeDtypeStruct((3, OUT_VEC, Ep), jnp.float32))

    out_s_t, out_v_t = pl.pallas_call(
        message_kernel,
        grid=(Ep // TE,),
        in_specs=in_specs,
        out_specs=out_specs,
        out_shape=out_shape,
        compiler_params=pltpu.CompilerParams(dimension_semantics=("parallel",)),
    )(ns_g, nv_g, es_t, ev_t, *edge_weights)

    # back to the module-facing layout; drop padded edges
    out_s = out_s_t.T[:E]                                  # [E, OUT_SCA]
    out_v = jnp.transpose(out_v_t, (0, 2, 1))[:, :E]       # [3, E, OUT_VEC]

    if annealing:
        # glue-level elementwise cutoff envelope (plain JAX)
        C = 0.5 * (jnp.cos(dist_ij * jnp.pi / CUTOFF) + 1.0)
        C = C * (dist_ij <= CUTOFF) * (dist_ij >= 0.0)
        out_s = out_s * C[:, None]
        out_v = out_v * C[None, :, None]
    return out_s, out_v


# ------------------------------ param init -----------------------------------
def init_params(key):
    def W(k, shape, scale=0.2):
        return scale * jax.random.normal(k, shape, dtype=jnp.float32)

    shapes = {
        "nWv1": (NODE_VEC, NGL_HID), "nWv2": (NGL_HID, OUT_VEC),
        "nWs": (NGL_HID + NODE_SCA, OUT_SCA), "nWg": (OUT_SCA, OUT_VEC), "nbg": (1, OUT_VEC),
        "eWv1": (EDGE_VEC, EGL_HID), "eWv2": (EGL_HID, HID_VEC),
        "eWs": (EGL_HID + EDGE_SCA, HID_SCA), "eWg": (HID_SCA, HID_VEC), "ebg": (1, HID_VEC),
        "eWd": (HID_VEC, HID_VEC),
        "Wsca": (HID_SCA, OUT_SCA), "bsca": (1, OUT_SCA),
        "We2n": (HID_SCA, OUT_VEC), "be2n": (1, OUT_VEC),
        "Wn2e": (OUT_SCA, OUT_VEC), "bn2e": (1, OUT_VEC),
        "Wevn": (HID_VEC, OUT_VEC), "bevn": (1, OUT_VEC),
        "oWv1": (OUT_VEC, OGL_HID), "oWv2": (OGL_HID, OUT_VEC),
        "oWs": (OGL_HID + OUT_SCA, OUT_SCA), "oWg": (OUT_SCA, OUT_VEC), "obg": (1, OUT_VEC),
    }
    keys = jax.random.split(key, len(PARAM_ORDER))
    return {name: W(k, shapes[name]) for name, k in zip(PARAM_ORDER, keys)}


# ---------------------------- pure-JAX reference ------------------------------
def reference(p, node_scalar, node_vector, edge_scalar, edge_vector, edge_index):
    def vn(v, W, b=None):
        out = jnp.einsum("ktc,cd->ktd", v, W)
        return out if b is None else out + b[None]

    def gvl(s, v, Wv1, Wv2, Ws, Wg, bg):
        vi = vn(v, Wv1)
        vnorm = jnp.sqrt(jnp.sum(vi * vi, axis=0))
        out_s = jnp.concatenate([vnorm, s], axis=-1) @ Ws
        out_v = vn(vi, Wv2)
        gate = jax.nn.sigmoid(out_s @ Wg + bg)
        return out_s, gate[None] * out_v

    ns, nv = gvl(node_scalar, node_vector, p["nWv1"], p["nWv2"], p["nWs"], p["nWg"], p["nbg"])
    ns, nv = ns[edge_index], nv[:, edge_index, :]
    es_l, ev_l = gvl(edge_scalar, edge_vector, p["eWv1"], p["eWv2"], p["eWs"], p["eWg"], p["ebg"])
    d = vn(ev_l, p["eWd"])
    dot = jnp.sum(ev_l * d, axis=0, keepdims=True)
    mask = (dot >= 0).astype(jnp.float32)
    dns = jnp.sum(d * d, axis=0, keepdims=True)
    ev = 0.01 * ev_l + 0.99 * (mask * ev_l + (1 - mask) * (ev_l - dot / (dns + EPS) * d))
    es = jnp.where(es_l >= 0, es_l, 0.01 * es_l)
    y_s = ns * (es @ p["Wsca"] + p["bsca"])
    y_nv = (es @ p["We2n"] + p["be2n"])[None] * nv
    ev_lin = vn(ev, p["Wevn"], p["bevn"])
    y_ev = (ns @ p["Wn2e"] + p["bn2e"])[None] * ev_lin
    y_v = y_nv + y_ev
    return gvl(y_s, y_v, p["oWv1"], p["oWv2"], p["oWs"], p["oWg"], p["obg"])


# --------------------------------- main ---------------------------------------
if __name__ == "__main__":
    key = jax.random.PRNGKey(0)
    kroot, k1, k2, k3, k4, k5 = jax.random.split(key, 6)
    # small graph; E = 2 * TE keeps the edge grid at >= 2 parallel steps (v7x megacore)
    N, E = 64, 1024

    params = init_params(kroot)
    node_scalar = jax.random.normal(k1, (N, NODE_SCA), dtype=jnp.float32)
    node_vector = jax.random.normal(k2, (3, N, NODE_VEC), dtype=jnp.float32)
    edge_scalar = jax.random.normal(k3, (E, EDGE_SCA), dtype=jnp.float32)
    edge_vector = jax.random.normal(k4, (3, E, EDGE_VEC), dtype=jnp.float32)
    edge_index = jax.random.randint(k5, (E,), 0, N)

    out_s, out_v = message_module_pallas(
        params, node_scalar, node_vector, edge_scalar, edge_vector, edge_index)
    jax.block_until_ready((out_s, out_v))

    ref_s, ref_v = reference(params, node_scalar, node_vector, edge_scalar, edge_vector, edge_index)
    assert out_s.shape == (E, OUT_SCA) and out_v.shape == (3, E, OUT_VEC)
    # bf16 activation storage (f32 accumulation) -> looser tolerance than pure-f32 path
    err_s = float(np.max(np.abs(np.asarray(out_s) - np.asarray(ref_s))))
    err_v = float(np.max(np.abs(np.asarray(out_v) - np.asarray(ref_v))))
    assert np.allclose(np.asarray(out_s), np.asarray(ref_s), rtol=5e-2, atol=5e-2), err_s
    assert np.allclose(np.asarray(out_v), np.asarray(ref_v), rtol=5e-2, atol=5e-2), err_v
    print("KERNEL_OK")
</pallas_src>

<mosaic_0001>
module attributes {stable_mosaic.version = 11 : i64} {
  func.func @node_kernel(%arg0: i32, %arg1: memref<16x512xbf16, #tpu.memory_space<vmem>>, %arg2: memref<3x8x512xbf16, #tpu.memory_space<vmem>>, %arg3: memref<8x8xf32, #tpu.memory_space<vmem>>, %arg4: memref<8x8xf32, #tpu.memory_space<vmem>>, %arg5: memref<16x8xf32, #tpu.memory_space<vmem>>, %arg6: memref<16x16xf32, #tpu.memory_space<vmem>>, %arg7: memref<8x16xf32, #tpu.memory_space<vmem>>, %arg8: memref<8x1xf32, #tpu.memory_space<vmem>>, %arg9: memref<16x512xbf16, #tpu.memory_space<vmem>>, %arg10: memref<3x8x512xbf16, #tpu.memory_space<vmem>>) attributes {dimension_semantics = [#tpu.dimension_semantics<parallel>], iteration_bounds = array<i64: 1>, scalar_prefetch = 0 : i64, scratch_operands = 0 : i64, tpu.core_type = #tpu.core_type<tc>, window_params = [{transform_indices = @transform_0, window_bounds = array<i64: 16, 512>}, {transform_indices = @transform_1, window_bounds = array<i64: 3, 8, 512>}, {pipeline_mode = #tpu.pipeline_mode<synchronous>, transform_indices = @transform_2, window_bounds = array<i64: 8, 8>}, {pipeline_mode = #tpu.pipeline_mode<synchronous>, transform_indices = @transform_3, window_bounds = array<i64: 8, 8>}, {pipeline_mode = #tpu.pipeline_mode<synchronous>, transform_indices = @transform_4, window_bounds = array<i64: 16, 8>}, {pipeline_mode = #tpu.pipeline_mode<synchronous>, transform_indices = @transform_5, window_bounds = array<i64: 16, 16>}, {pipeline_mode = #tpu.pipeline_mode<synchronous>, transform_indices = @transform_6, window_bounds = array<i64: 8, 16>}, {pipeline_mode = #tpu.pipeline_mode<synchronous>, transform_indices = @transform_7, window_bounds = array<i64: 8, 1>}, {transform_indices = @transform_8, window_bounds = array<i64: 16, 512>}, {transform_indices = @transform_9, window_bounds = array<i64: 3, 8, 512>}]} {
    %c0 = arith.constant 0 : index
    %c0_0 = arith.constant 0 : index
    %0 = vector.load %arg1[%c0, %c0_0] : memref<16x512xbf16, #tpu.memory_space<vmem>>, vector<16x512xbf16>
    %c0_1 = arith.constant 0 : index
    %c0_2 = arith.constant 0 : index
    %c0_3 = arith.constant 0 : index
    %1 = vector.load %arg2[%c0_1, %c0_2, %c0_3] : memref<3x8x512xbf16, #tpu.memory_space<vmem>>, vector<3x8x512xbf16>
    %c0_4 = arith.constant 0 : index
    %c0_5 = arith.constant 0 : index
    %2 = vector.load %arg3[%c0_4, %c0_5] : memref<8x8xf32, #tpu.memory_space<vmem>>, vector<8x8xf32>
    %c0_6 = arith.constant 0 : index
    %c0_7 = arith.constant 0 : index
    %3 = vector.load %arg4[%c0_6, %c0_7] : memref<8x8xf32, #tpu.memory_space<vmem>>, vector<8x8xf32>
    %c0_8 = arith.constant 0 : index
    %c0_9 = arith.constant 0 : index
    %4 = vector.load %arg5[%c0_8, %c0_9] : memref<16x8xf32, #tpu.memory_space<vmem>>, vector<16x8xf32>
    %c0_10 = arith.constant 0 : index
    %c0_11 = arith.constant 0 : index
    %5 = vector.load %arg6[%c0_10, %c0_11] : memref<16x16xf32, #tpu.memory_space<vmem>>, vector<16x16xf32>
    %c0_12 = arith.constant 0 : index
    %c0_13 = arith.constant 0 : index
    %6 = vector.load %arg7[%c0_12, %c0_13] : memref<8x16xf32, #tpu.memory_space<vmem>>, vector<8x16xf32>
    %c0_14 = arith.constant 0 : index
    %c0_15 = arith.constant 0 : index
    %7 = vector.load %arg8[%c0_14, %c0_15] : memref<8x1xf32, #tpu.memory_space<vmem>>, vector<8x1xf32>
    %8 = vector.extract_strided_slice %1 {offsets = [0, 0, 0], sizes = [1, 8, 512], strides = [1, 1, 1]} : vector<3x8x512xbf16> to vector<1x8x512xbf16>
    %9 = vector.shape_cast %8 : vector<1x8x512xbf16> to vector<8x512xbf16>
    %10 = arith.truncf %2 : vector<8x8xf32> to vector<8x8xbf16>
    %cst = arith.constant dense<0.000000e+00> : vector<8x512xf32>
    %11 = tpu.matmul %10, %9, %cst {dimension_numbers = #tpu.dot_dimension_numbers<[1], [0], [0], [1], [0, 0, 1, 1], [], []>} : vector<8x8xbf16>, vector<8x512xbf16>, vector<8x512xf32> -> vector<8x512xf32>
    %12 = vector.extract_strided_slice %1 {offsets = [1, 0, 0], sizes = [1, 8, 512], strides = [1, 1, 1]} : vector<3x8x512xbf16> to vector<1x8x512xbf16>
    %13 = vector.shape_cast %12 : vector<1x8x512xbf16> to vector<8x512xbf16>
    %14 = arith.truncf %2 : vector<8x8xf32> to vector<8x8xbf16>
    %cst_16 = arith.constant dense<0.000000e+00> : vector<8x512xf32>
    %15 = tpu.matmul %14, %13, %cst_16 {dimension_numbers = #tpu.dot_dimension_numbers<[1], [0], [0], [1], [0, 0, 1, 1], [], []>} : vector<8x8xbf16>, vector<8x512xbf16>, vector<8x512xf32> -> vector<8x512xf32>
    %16 = vector.extract_strided_slice %1 {offsets = [2, 0, 0], sizes = [1, 8, 512], strides = [1, 1, 1]} : vector<3x8x512xbf16> to vector<1x8x512xbf16>
    %17 = vector.shape_cast %16 : vector<1x8x512xbf16> to vector<8x512xbf16>
    %18 = arith.truncf %2 : vector<8x8xf32> to vector<8x8xbf16>
    %cst_17 = arith.constant dense<0.000000e+00> : vector<8x512xf32>
    %19 = tpu.matmul %18, %17, %cst_17 {dimension_numbers = #tpu.dot_dimension_numbers<[1], [0], [0], [1], [0, 0, 1, 1], [], []>} : vector<8x8xbf16>, vector<8x512xbf16>, vector<8x512xf32> -> vector<8x512xf32>
    %20 = vector.shape_cast %11 : vector<8x512xf32> to vector<1x8x512xf32>
    %21 = vector.shape_cast %15 : vector<8x512xf32> to vector<1x8x512xf32>
    %22 = vector.shape_cast %19 : vector<8x512xf32> to vector<1x8x512xf32>
    %23 = tpu.concatenate %20, %21, %22 in 0 : vector<1x8x512xf32>, vector<1x8x512xf32>, vector<1x8x512xf32> -> vector<3x8x512xf32>
    %24 = vector.extract_strided_slice %23 {offsets = [0, 0, 0], sizes = [1, 8, 512], strides = [1, 1, 1]} : vector<3x8x512xf32> to vector<1x8x512xf32>
    %25 = vector.shape_cast %24 : vector<1x8x512xf32> to vector<8x512xf32>
    %26 = vector.extract_strided_slice %23 {offsets = [0, 0, 0], sizes = [1, 8, 512], strides = [1, 1, 1]} : vector<3x8x512xf32> to vector<1x8x512xf32>
    %27 = vector.shape_cast %26 : vector<1x8x512xf32> to vector<8x512xf32>
    %28 = arith.mulf %25, %27 : vector<8x512xf32>
    %29 = vector.extract_strided_slice %23 {offsets = [1, 0, 0], sizes = [1, 8, 512], strides = [1, 1, 1]} : vector<3x8x512xf32> to vector<1x8x512xf32>
    %30 = vector.shape_cast %29 : vector<1x8x512xf32> to vector<8x512xf32>
    %31 = vector.extract_strided_slice %23 {offsets = [1, 0, 0], sizes = [1, 8, 512], strides = [1, 1, 1]} : vector<3x8x512xf32> to vector<1x8x512xf32>
    %32 = vector.shape_cast %31 : vector<1x8x512xf32> to vector<8x512xf32>
    %33 = arith.mulf %30, %32 : vector<8x512xf32>
    %34 = arith.addf %28, %33 : vector<8x512xf32>
    %35 = vector.extract_strided_slice %23 {offsets = [2, 0, 0], sizes = [1, 8, 512], strides = [1, 1, 1]} : vector<3x8x512xf32> to vector<1x8x512xf32>
    %36 = vector.shape_cast %35 : vector<1x8x512xf32> to vector<8x512xf32>
    %37 = vector.extract_strided_slice %23 {offsets = [2, 0, 0], sizes = [1, 8, 512], strides = [1, 1, 1]} : vector<3x8x512xf32> to vector<1x8x512xf32>
    %38 = vector.shape_cast %37 : vector<1x8x512xf32> to vector<8x512xf32>
    %39 = arith.mulf %36, %38 : vector<8x512xf32>
    %40 = arith.addf %34, %39 : vector<8x512xf32>
    %41 = math.sqrt %40 : vector<8x512xf32>
    %42 = arith.truncf %4 : vector<16x8xf32> to vector<16x8xbf16>
    %43 = arith.truncf %41 : vector<8x512xf32> to vector<8x512xbf16>
    %cst_18 = arith.constant dense<0.000000e+00> : vector<16x512xf32>
    %44 = tpu.matmul %42, %43, %cst_18 {dimension_numbers = #tpu.dot_dimension_numbers<[1], [0], [0], [1], [0, 0, 1, 1], [], []>} : vector<16x8xbf16>, vector<8x512xbf16>, vector<16x512xf32> -> vector<16x512xf32>
    %45 = arith.truncf %5 : vector<16x16xf32> to vector<16x16xbf16>
    %cst_19 = arith.constant dense<0.000000e+00> : vector<16x512xf32>
    %46 = tpu.matmul %45, %0, %cst_19 {dimension_numbers = #tpu.dot_dimension_numbers<[1], [0], [0], [1], [0, 0, 1, 1], [], []>} : vector<16x16xbf16>, vector<16x512xbf16>, vector<16x512xf32> -> vector<16x512xf32>
    %47 = arith.addf %44, %46 : vector<16x512xf32>
    %48 = vector.extract_strided_slice %23 {offsets = [0, 0, 0], sizes = [1, 8, 512], strides = [1, 1, 1]} : vector<3x8x512xf32> to vector<1x8x512xf32>
    %49 = vector.shape_cast %48 : vector<1x8x512xf32> to vector<8x512xf32>
    %50 = arith.truncf %3 : vector<8x8xf32> to vector<8x8xbf16>
    %51 = arith.truncf %49 : vector<8x512xf32> to vector<8x512xbf16>
    %cst_20 = arith.constant dense<0.000000e+00> : vector<8x512xf32>
    %52 = tpu.matmul %50, %51, %cst_20 {dimension_numbers = #tpu.dot_dimension_numbers<[1], [0], [0], [1], [0, 0, 1, 1], [], []>} : vector<8x8xbf16>, vector<8x512xbf16>, vector<8x512xf32> -> vector<8x512xf32>
    %53 = vector.extract_strided_slice %23 {offsets = [1, 0, 0], sizes = [1, 8, 512], strides = [1, 1, 1]} : vector<3x8x512xf32> to vector<1x8x512xf32>
    %54 = vector.shape_cast %53 : vector<1x8x512xf32> to vector<8x512xf32>
    %55 = arith.truncf %3 : vector<8x8xf32> to vector<8x8xbf16>
    %56 = arith.truncf %54 : vector<8x512xf32> to vector<8x512xbf16>
    %cst_21 = arith.constant dense<0.000000e+00> : vector<8x512xf32>
    %57 = tpu.matmul %55, %56, %cst_21 {dimension_numbers = #tpu.dot_dimension_numbers<[1], [0], [0], [1], [0, 0, 1, 1], [], []>} : vector<8x8xbf16>, vector<8x512xbf16>, vector<8x512xf32> -> vector<8x512xf32>
    %58 = vector.extract_strided_slice %23 {offsets = [2, 0, 0], sizes = [1, 8, 512], strides = [1, 1, 1]} : vector<3x8x512xf32> to vector<1x8x512xf32>
    %59 = vector.shape_cast %58 : vector<1x8x512xf32> to vector<8x512xf32>
    %60 = arith.truncf %3 : vector<8x8xf32> to vector<8x8xbf16>
    %61 = arith.truncf %59 : vector<8x512xf32> to vector<8x512xbf16>
    %cst_22 = arith.constant dense<0.000000e+00> : vector<8x512xf32>
    %62 = tpu.matmul %60, %61, %cst_22 {dimension_numbers = #tpu.dot_dimension_numbers<[1], [0], [0], [1], [0, 0, 1, 1], [], []>} : vector<8x8xbf16>, vector<8x512xbf16>, vector<8x512xf32> -> vector<8x512xf32>
    %63 = vector.shape_cast %52 : vector<8x512xf32> to vector<1x8x512xf32>
    %64 = vector.shape_cast %57 : vector<8x512xf32> to vector<1x8x512xf32>
    %65 = vector.shape_cast %62 : vector<8x512xf32> to vector<1x8x512xf32>
    %66 = tpu.concatenate %63, %64, %65 in 0 : vector<1x8x512xf32>, vector<1x8x512xf32>, vector<1x8x512xf32> -> vector<3x8x512xf32>
    %67 = arith.truncf %6 : vector<8x16xf32> to vector<8x16xbf16>
    %68 = arith.truncf %47 : vector<16x512xf32> to vector<16x512xbf16>
    %cst_23 = arith.constant dense<0.000000e+00> : vector<8x512xf32>
    %69 = tpu.matmul %67, %68, %cst_23 {dimension_numbers = #tpu.dot_dimension_numbers<[1], [0], [0], [1], [0, 0, 1, 1], [], []>} : vector<8x16xbf16>, vector<16x512xbf16>, vector<8x512xf32> -> vector<8x512xf32>
    %70 = vector.broadcast %7 : vector<8x1xf32> to vector<8x512xf32>
    %71 = arith.addf %69, %70 : vector<8x512xf32>
    %72 = arith.negf %71 : vector<8x512xf32>
    %73 = math.exp %72 : vector<8x512xf32>
    %cst_24 = arith.constant 1.000000e+00 : f32
    %74 = vector.broadcast %cst_24 : f32 to vector<8x512xf32>
    %75 = arith.addf %74, %73 : vector<8x512xf32>
    %76 = arith.divf %74, %75 : vector<8x512xf32>
    %77 = vector.shape_cast %76 : vector<8x512xf32> to vector<1x8x512xf32>
    %78 = vector.broadcast %77 : vector<1x8x512xf32> to vector<3x8x512xf32>
    %79 = arith.mulf %78, %66 : vector<3x8x512xf32>
    %80 = arith.truncf %47 : vector<16x512xf32> to vector<16x512xbf16>
    %c0_25 = arith.constant 0 : index
    %c0_26 = arith.constant 0 : index
    %81 = vector.load %arg9[%c0_25, %c0_26] : memref<16x512xbf16, #tpu.memory_space<vmem>>, vector<16x512xbf16>
    tpu.vector_store %arg9[%c0_25, %c0_26], %80 {strides = array<i32>} : memref<16x512xbf16, #tpu.memory_space<vmem>>, vector<16x512xbf16>,
    %82 = arith.truncf %79 : vector<3x8x512xf32> to vector<3x8x512xbf16>
    %c0_27 = arith.constant 0 : index
    %c0_28 = arith.constant 0 : index
    %c0_29 = arith.constant 0 : index
    %83 = vector.load %arg10[%c0_27, %c0_28, %c0_29] : memref<3x8x512xbf16, #tpu.memory_space<vmem>>, vector<3x8x512xbf16>
    tpu.vector_store %arg10[%c0_27, %c0_28, %c0_29], %82 {strides = array<i32>} : memref<3x8x512xbf16, #tpu.memory_space<vmem>>, vector<3x8x512xbf16>,
    return
  }
  func.func @transform_0(%arg0: i32) -> (i32, i32) {
    %c0_i32 = arith.constant 0 : i32
    %c0_i32_0 = arith.constant 0 : i32
    return %c0_i32, %arg0 : i32, i32
  }
  func.func @transform_1(%arg0: i32) -> (i32, i32, i32) {
    %c0_i32 = arith.constant 0 : i32
    %c0_i32_0 = arith.constant 0 : i32
    %c0_i32_1 = arith.constant 0 : i32
    return %c0_i32, %c0_i32_0, %arg0 : i32, i32, i32
  }
  func.func @transform_2(%arg0: i32) -> (i32, i32) {
    %c0_i32 = arith.constant 0 : i32
    %c0_i32_0 = arith.constant 0 : i32
    %c0_i32_1 = arith.constant 0 : i32
    return %c0_i32, %c0_i32_0 : i32, i32
  }
  func.func @transform_3(%arg0: i32) -> (i32, i32) {
    %c0_i32 = arith.constant 0 : i32
    %c0_i32_0 = arith.constant 0 : i32
    %c0_i32_1 = arith.constant 0 : i32
    return %c0_i32, %c0_i32_0 : i32, i32
  }
  func.func @transform_4(%arg0: i32) -> (i32, i32) {
    %c0_i32 = arith.constant 0 : i32
    %c0_i32_0 = arith.constant 0 : i32
    %c0_i32_1 = arith.constant 0 : i32
    return %c0_i32, %c0_i32_0 : i32, i32
  }
  func.func @transform_5(%arg0: i32) -> (i32, i32) {
    %c0_i32 = arith.constant 0 : i32
    %c0_i32_0 = arith.constant 0 : i32
    %c0_i32_1 = arith.constant 0 : i32
    return %c0_i32, %c0_i32_0 : i32, i32
  }
  func.func @transform_6(%arg0: i32) -> (i32, i32) {
    %c0_i32 = arith.constant 0 : i32
    %c0_i32_0 = arith.constant 0 : i32
    %c0_i32_1 = arith.constant 0 : i32
    return %c0_i32, %c0_i32_0 : i32, i32
  }
  func.func @transform_7(%arg0: i32) -> (i32, i32) {
    %c0_i32 = arith.constant 0 : i32
    %c0_i32_0 = arith.constant 0 : i32
    %c0_i32_1 = arith.constant 0 : i32
    return %c0_i32, %c0_i32_0 : i32, i32
  }
  func.func @transform_8(%arg0: i32) -> (i32, i32) {
    %c0_i32 = arith.constant 0 : i32
    %c0_i32_0 = arith.constant 0 : i32
    return %c0_i32, %arg0 : i32, i32
  }
  func.func @transform_9(%arg0: i32) -> (i32, i32, i32) {
    %c0_i32 = arith.constant 0 : i32
    %c0_i32_0 = arith.constant 0 : i32
    %c0_i32_1 = arith.constant 0 : i32
    return %c0_i32, %c0_i32_0, %arg0 : i32, i32, i32
  }
}

</mosaic_0001>

<bundles_post_ra>
// kernel: tpu_custom_call.1
= control target key start
LH: loop header
LB: loop body
LE: loop exit
PB: predicated region body
PF: predicated region fallthrough
CT: control target
= control target key end

     0   :  { %15 = vsyncpa [#allocation3], 0  ;;  %s1847_s0 = inlined_call_operand.vmem [shape: bf16[16,512], index: 0, kind: input, shape index: {}]   ;;  %s1848_s1 = inlined_call_operand.hbm [shape: bf16[3,8,512], index: 1, kind: input, shape index: {}]   ;;  %s1849_s2 = inlined_call_operand.hbm [shape: f32[8,8], index: 2, kind: input, shape index: {}]   ;;  %s1850_s3 = inlined_call_operand.hbm [shape: f32[8,8], index: 3, kind: input, shape index: {}]   ;;  %s1851_s4 = inlined_call_operand.vmem [shape: f32[16,8], index: 4, kind: input, shape index: {}]   ;;  %s1852_s5 = inlined_call_operand.vmem [shape: f32[16,16], index: 5, kind: input, shape index: {}]   ;;  %s1853_s6 = inlined_call_operand.hbm [shape: f32[8,16], index: 6, kind: input, shape index: {}]   ;;  %s1854_s7 = inlined_call_operand.vmem [shape: f32[8,1], index: 7, kind: input, shape index: {}]   ;;  %s1855_s8 = inlined_call_operand.hbm [shape: bf16[16,512], index: 8, kind: output, shape index: {0}]   ;;  %s1856_s9 = inlined_call_operand.hbm [shape: bf16[3,8,512], index: 9, kind: output, shape index: {1}]  }
   0x1   :  { %16 = vsyncpa [#allocation6], 0 }
   0x2   :  { %17 = vsyncpa [#allocation9], 0 }
   0x3   :  { %18 = vsyncpa [#allocation4], 0 }
   0x4   :  { %19 = vsyncpa [#allocation12], 0  ;;  %s1500_s30 = smov [#allocation5]   ;;  %s1501_s11 = smov [#allocation2]  }
   0x5   :  { %s40_s10 = sshll.u32 %s1500_s30, 4  ;;  %s27_s12 = sshll.u32 %s1501_s11, 4  ;;  %s41_s10 = int_to_ptr.vmem [resolvable:$true] %s40_s10  ;;  %s1559_s12 = int_to_ptr.vmem [resolvable:$true] %s27_s12 }
   0x6   :  { %s1358_s15 = scalar_lea.hbm %s1849_s2, 128 }
   0x7   :  { %p1359_p0 = scmp.ne.s32.totalorder %s1849_s2, %s1358_s15  ;;  %p1362_p1 = scmp.lt.u32.totalorder %s1358_s15, %s1849_s2 }
   0x9   :  { %p1364_p2 = pnand %p1362_p1, %p1359_p0 }
   0xb   :  { %1367 = shalt.err (!%p1364_p2)
}
   0xc   :  { %s1368_s20 = scalar_lea.vmem %s41_s10, 128  ;;  %p1373_p4 = scmp.lt.s32.totalorder %s41_s10, %s41_s10 }
   0xd   :  { %p1369_p3 = scmp.ne.s32.totalorder %s41_s10, %s1368_s20  ;;  %p1374_p5 = scmp.lt.s32.totalorder %s1368_s20, %s1368_s20 }
   0xf   :  { %p1375_p6 = por %p1374_p5, %p1373_p4 }
  0x11   :  { %p1376_p7 = pnand %p1375_p6, %p1369_p3 }
  0x13   :  { %1379 = shalt.err (!%p1376_p7)
}
  0x14   :  { %43 = dma.hbm_to_vmem [thread:$0]  %s1849_s2, 128, %s41_s10, [#allocation6]  }
  0x15   :  { %s1380_s25 = scalar_lea.hbm %s1848_s1, 768 }
  0x16   :  { %p1381_p8 = scmp.ne.s32.totalorder %s1848_s1, %s1380_s25  ;;  %p1384_p9 = scmp.lt.u32.totalorder %s1380_s25, %s1848_s1 }
  0x18   :  { %p1386_p10 = pnand %p1384_p9, %p1381_p8 }
  0x1a   :  { %1389 = shalt.err (!%p1386_p10)
}
  0x1b   :  { %s1390_s30 = scalar_lea.vmem %s1559_s12, 768  ;;  %p1395_p12 = scmp.lt.s32.totalorder %s1559_s12, %s1559_s12 }
  0x1c   :  { %p1391_p11 = scmp.ne.s32.totalorder %s1559_s12, %s1390_s30  ;;  %p1396_p13 = scmp.lt.s32.totalorder %s1390_s30, %s1390_s30 }
  0x1e   :  { %p1397_p0 = por %p1396_p13, %p1395_p12 }
  0x20   :  { %p1398_p1 = pnand %p1397_p0, %p1391_p11 }
  0x22   :  { %1401 = shalt.err (!%p1398_p1)
}
  0x23   :  { %s1502_s2 = smov 256   ;;  %s1503_s10 = smov 16  }
  0x24   :  { %33 = dma.hbm_to_vmem [thread:$0]  %s1848_s1, 768, %s1559_s12, [#allocation3], %s1502_s2, %s1502_s2, %s1503_s10  }
  0x25   :  { %s1504_s14 = smov [#allocation7]   ;;  %s1505_s16 = smov [#allocation8]  }
  0x26   :  { %s50_s15 = sshll.u32 %s1504_s14, 4  ;;  %s64_s17 = sshll.u32 %s1505_s16, 4  ;;  %s51_s15 = int_to_ptr.vmem [resolvable:$true] %s50_s15  ;;  %s65_s17 = int_to_ptr.vmem [resolvable:$true] %s64_s17 }
  0x27   :  { %s1402_s20 = scalar_lea.hbm %s1850_s3, 128 }
  0x28   :  { %p1403_p2 = scmp.ne.s32.totalorder %s1850_s3, %s1402_s20  ;;  %p1406_p3 = scmp.lt.u32.totalorder %s1402_s20, %s1850_s3 }
  0x2a   :  { %p1408_p4 = pnand %p1406_p3, %p1403_p2 }
  0x2c   :  { %1411 = shalt.err (!%p1408_p4)
}
  0x2d   :  { %s1412_s1 = scalar_lea.vmem %s51_s15, 128  ;;  %p1417_p6 = scmp.lt.s32.totalorder %s51_s15, %s51_s15 }
  0x2e   :  { %p1413_p5 = scmp.ne.s32.totalorder %s51_s15, %s1412_s1  ;;  %p1418_p7 = scmp.lt.s32.totalorder %s1412_s1, %s1412_s1 }
  0x30   :  { %p1419_p8 = por %p1418_p7, %p1417_p6 }
  0x32   :  { %p1420_p9 = pnand %p1419_p8, %p1413_p5 }
  0x34   :  { %1423 = shalt.err (!%p1420_p9)
}
  0x35   :  { %53 = dma.hbm_to_vmem [thread:$0]  %s1850_s3, 128, %s51_s15, [#allocation6]  }
  0x36   :  { %s1424_s28 = scalar_lea.hbm %s1853_s6, 128 }
  0x37   :  { %p1425_p10 = scmp.ne.s32.totalorder %s1853_s6, %s1424_s28  ;;  %p1428_p11 = scmp.lt.u32.totalorder %s1424_s28, %s1853_s6 }
  0x39   :  { %p1430_p12 = pnand %p1428_p11, %p1425_p10 }
  0x3b   :  { %1433 = shalt.err (!%p1430_p12)
}
  0x3c   :  { %s1434_s14 = scalar_lea.vmem %s65_s17, 128  ;;  %p1439_p0 = scmp.lt.s32.totalorder %s65_s17, %s65_s17 }
  0x3d   :  { %p1435_p13 = scmp.ne.s32.totalorder %s65_s17, %s1434_s14  ;;  %p1440_p1 = scmp.lt.s32.totalorder %s1434_s14, %s1434_s14 }
  0x3f   :  { %p1441_p2 = por %p1440_p1, %p1439_p0 }
  0x41   :  { %p1442_p3 = pnand %p1441_p2, %p1435_p13 }
  0x43   :  { %1445 = shalt.err (!%p1442_p3)
}
  0x44   :  { %67 = dma.hbm_to_vmem [thread:$0]  %s1853_s6, 128, %s65_s17, [#allocation9]  }
  0x45   :  { %1490 = dma.done.wait [#allocation3], 768  }
  0x46   :  { %1491 = vsyncadd [#allocation3], 4294966528 }
  0x47   :  { %1492 = dma.done.wait [#allocation6], 256  }
  0x48   :  { %1493 = vsyncadd [#allocation6], 4294967040 }
  0x49   :  { %1494 = dma.done.wait [#allocation9], 128  }
  0x4a   :  { %1495 = vsyncadd [#allocation9], 4294967168  ;;  %v1506_v0 = vmov 0   ;;  %v87_v1 = vld [vmem:[#allocation2] sm:$0xff]  ;;  %vm116_vm0 = vcmask 1043456   ;;  %v88_v2 = vld [vmem:[#allocation2 + $0x8] sm:$0xff] }
  0x4b   :  { %161 = vmatprep.mubr.bf16.mxu0 %v1506_v0  ;;  %202 = vmatprep.mubr.bf16.mxu1 %v1506_v0  ;;  %v93_v3 = vld [vmem:[#allocation5] sm:$0xff]  ;;  %v1227_v4 = vcombine.high %v87_v1, %v87_v1  ;;  %v1229_v5 = vcombine.high %v88_v2, %v88_v2  ;;  %v1226_v6 = vcombine.low %v87_v1, %v87_v1  ;;  %v90_v9 = vld [vmem:[#allocation2 + $0x18] sm:$0xff]  ;;  %v91_v13 = vld [vmem:[#allocation2 + $0x20] sm:$0xff]  ;;  %vm112_vm1 = vcmask 64512  }
  0x4c   :  { %1315 = vset.pattern.permute.xlu0 %v1506_v0  ;;  %v1228_v7 = vcombine.low %v88_v2, %v88_v2  ;;  %v89_v8 = vld [vmem:[#allocation2 + $0x10] sm:$0xff]  ;;  %v1237_v11 = vcombine.high %v90_v9, %v90_v9  ;;  %v101_v16 = vpack.c.bf16 %v93_v3, %v93_v3  ;;  %v1236_v17 = vcombine.low %v90_v9, %v90_v9  ;;  %v92_v18 = vld [vmem:[#allocation2 + $0x28] sm:$0xff]  ;;  %v97_v31 = vld [vmem:[%s1852_s5] sm:$0xff] }
  0x4d   :  { %v1235_v10 = vcombine.high %v89_v8, %v89_v8  ;;  %v1234_v12 = vcombine.low %v89_v8, %v89_v8  ;;  %1230 = vmatprep.subr.msk.bf16.mxu0 %vm116_vm0, %v1227_v4  ;;  %1232 = vmatprep.subr.msk.bf16.mxu1 %vm116_vm0, %v1229_v5  ;;  %v118_v14 = vsel %vm116_vm0, %v1226_v6, 0  ;;  %v1243_v21 = vcombine.high %v91_v13, %v91_v13  ;;  %v1328_v27 = vld [vmem:[%s1847_s0] ss:$16 sps:$4 sm:$0xff]   ;;  %v1330_v28 = vld [vmem:[%s1847_s0 + $0x4] ss:$16 sps:$4 sm:$0xff]   ;;  %v98_v32 = vld [vmem:[%s1852_s5 + $0x8] sm:$0xff] }
  0x4e   :  { %v124_v15 = vsel %vm116_vm0, %v1228_v7, 0  ;;  %130 = vmatpush1.bf16.msra.mxu0 %v118_v14  ;;  %v228_v20 = vsel %vm116_vm0, %v1236_v17, 0  ;;  %v1245_v22 = vcombine.high %v92_v18, %v92_v18  ;;  %v1242_v23 = vcombine.low %v91_v13, %v91_v13  ;;  %v1331_v29 = vld [vmem:[%s1847_s0 + $0x8] ss:$16 sps:$4 sm:$0xff]   ;;  %v1333_v30 = vld [vmem:[%s1847_s0 + $0xc] ss:$16 sps:$4 sm:$0xff]  }
  0x4f   :  { %171 = vmatpush1.bf16.msra.mxu1 %v124_v15  ;;  %1238 = vmatprep.subr.msk.bf16.mxu0 %vm116_vm0, %v1235_v10  ;;  %v222_v19 = vsel %vm116_vm0, %v1234_v12, 0  ;;  %v1244_v24 = vcombine.low %v92_v18, %v92_v18  ;;  %v472_v33 = vpack.c.bf16 %v98_v32, %v97_v31  ;;  %vm493_vm2 = vcmask 130048  }
  0x50   :  { %1240 = vmatprep.subr.msk.bf16.mxu1 %vm116_vm0, %v1237_v11  ;;  %v326_v25 = vsel %vm116_vm0, %v1242_v23, 0 }
  0x51   :  { %1231 = vmatmul.mubr.msk.bf16.vlgmr.msra.gmra.mrb[0].mxu0 %vm112_vm1, %v101_v16  ;;  %v332_v26 = vsel %vm116_vm0, %v1244_v24, 0 }
  0x52   :  { %1233 = vmatmul.mubr.msk.bf16.vlgmr.msra.gmra.mrb[0].mxu1 %vm112_vm1, %v101_v16  ;;  %234 = vmatpush1.bf16.msra.mxu0 %v222_v19 }
  0x53   :  { %275 = vmatpush1.bf16.msra.mxu1 %v228_v20  ;;  %265 = vmatprep.mubr.bf16.mxu0 %v1506_v0 }
  0x54   :  { %306 = vmatprep.mubr.bf16.mxu1 %v1506_v0  ;;  %1246 = vmatprep.subr.msk.bf16.mxu0 %vm116_vm0, %v1243_v21 }
  0x55   :  { %1248 = vmatprep.subr.msk.bf16.mxu1 %vm116_vm0, %v1245_v22 }
  0x59   :  { %1239 = vmatmul.mubr.msk.bf16.vlgmr.msra.gmra.mrb[4].mxu0 %vm112_vm1, %v101_v16 }
  0x5a   :  { %1241 = vmatmul.mubr.msk.bf16.vlgmr.msra.gmra.mrb[4].mxu1 %vm112_vm1, %v101_v16  ;;  %338 = vmatpush1.bf16.msra.mxu0 %v326_v25 }
  0x5b   :  { %379 = vmatpush1.bf16.msra.mxu1 %v332_v26  ;;  %369 = vmatprep.mubr.bf16.mxu0 %v1506_v0 }
  0x5c   :  { %410 = vmatprep.mubr.bf16.mxu1 %v1506_v0  ;;  %497 = vmatprep.subr.bf16.mxu0 %v1330_v28 }
  0x5d   :  { %540 = vmatprep.subr.bf16.mxu1 %v1333_v30 }
  0x61   :  { %1247 = vmatmul.mubr.msk.bf16.vlgmr.msra.gmra.mrb[8].mxu0 %vm112_vm1, %v101_v16 }
  0x62   :  { %1249 = vmatmul.mubr.msk.bf16.vlgmr.msra.gmra.mrb[8].mxu1 %vm112_vm1, %v101_v16  ;;  %529 = vmatprep.mubr.bf16.mxu0 %v1506_v0 }
  0x63   :  { %572 = vmatprep.mubr.bf16.mxu1 %v1506_v0  ;;  %498 = vmatpush1.bf16.msra.mxu0 %v1328_v27 }
  0x64   :  { %541 = vmatpush1.bf16.msra.mxu1 %v1331_v29 }
  0x69   :  { %1254 = vmatmul.mubr.msk.bf16.vlgmr.msra.gmra.mrb[12].mxu0 %vm493_vm2, %v472_v33 }
  0x6a   :  { %1255 = vmatmul.mubr.msk.bf16.vlgmr.msra.gmra.mrb[12].mxu1 %vm493_vm2, %v472_v33  ;;  %630 = vmatprep.mubr.bf16.mxu0 %v1506_v0 }
  0x6b   :  { %673 = vmatprep.mubr.bf16.mxu1 %v1506_v0 }
 0x124   :  { %v1666_v34 = vpop.f32.mrb[0].mxu0 }
 0x125   :  { %v1668_v35 = vpop.f32.mrb[0].mxu1  ;;  %v1670_v36 = vpop.f32.mrb[1].mxu0  ;;  %v419_v44 = vmul.f32 %v1666_v34, %v1666_v34 }
 0x126   :  { %v1672_v37 = vpop.f32.mrb[1].mxu1  ;;  %v167_v38 = vpop.f32.mrb[2].mxu0  ;;  %v421_v45 = vmul.f32 %v1668_v35, %v1668_v35  ;;  %v420_v50 = vmul.f32 %v1670_v36, %v1670_v36 }
 0x127   :  { %v208_v39 = vpop.f32.mrb[2].mxu1  ;;  %v168_v40 = vpop.f32.mrb[3].mxu0  ;;  %v422_v51 = vmul.f32 %v1672_v37, %v1672_v37 }
 0x128   :  { %v209_v41 = vpop.f32.mrb[3].mxu1  ;;  %v95_v40 = vld [vmem:[%s1851_s4] sm:$0xff] }
 0x129   :  { %v96_v41 = vld [vmem:[%s1851_s4 + $0x8] sm:$0xff] }
 0x12c   :  { %v1674_v42 = vpop.f32.mrb[4].mxu0 }
 0x12d   :  { %v1676_v43 = vpop.f32.mrb[4].mxu1  ;;  %v423_v46 = vmul.f32 %v1674_v42, %v1674_v42  ;;  %v1686_v48 = vpop.f32.mrb[5].mxu0 }
 0x12e   :  { %v425_v47 = vmul.f32 %v1676_v43, %v1676_v43  ;;  %v1688_v49 = vpop.f32.mrb[5].mxu1  ;;  %v424_v52 = vmul.f32 %v1686_v48, %v1686_v48  ;;  %v271_v54 = vpop.f32.mrb[6].mxu0 }
 0x12f   :  { %v426_v53 = vmul.f32 %v1688_v49, %v1688_v49  ;;  %v312_v55 = vpop.f32.mrb[6].mxu1  ;;  %v427_v56 = vadd.f32 %v423_v46, %v419_v44  ;;  %v272_v58 = vpop.f32.mrb[7].mxu0  ;;  %v687_v54 = vpack.c.bf16 %v1668_v35, %v1668_v35  ;;  %v789_v35 = vpack.c.bf16 %v1688_v49, %v1688_v49 }
 0x130   :  { %v429_v57 = vadd.f32 %v425_v47, %v421_v45  ;;  %v313_v59 = vpop.f32.mrb[7].mxu1  ;;  %v428_v60 = vadd.f32 %v424_v52, %v420_v50  ;;  %v686_v52 = vpack.c.bf16 %v1670_v36, %v1670_v36  ;;  %v688_v55 = vpack.c.bf16 %v1672_v37, %v1672_v37 }
 0x131   :  { %v430_v61 = vadd.f32 %v426_v53, %v422_v51  ;;  %v685_v51 = vpack.c.bf16 %v1666_v34, %v1666_v34  ;;  %v467_v53 = vpack.c.bf16 %v96_v41, %v95_v40  ;;  %v787_v34 = vpack.c.bf16 %v1686_v48, %v1686_v48 }
 0x132   :  { %v699_v37 = vsel %vm116_vm0, %v687_v54, 0  ;;  %v786_v48 = vpack.c.bf16 %v1674_v42, %v1674_v42  ;;  %v788_v49 = vpack.c.bf16 %v1676_v43, %v1676_v43 }
 0x133   :  { %v693_v36 = vsel %vm116_vm0, %v685_v51, 0 }
 0x134   :  { %v1698_v62 = vpop.f32.mrb[8].mxu0  ;;  %v791_v59 = vsel %vm116_vm0, %v786_v48, 0  ;;  %v797_v42 = vsel %vm116_vm0, %v788_v49, 0 }
 0x135   :  { %v1700_v63 = vpop.f32.mrb[8].mxu1  ;;  %v431_v1 = vmul.f32 %v1698_v62, %v1698_v62  ;;  %v1706_v3 = vpop.f32.mrb[9].mxu0  ;;  %v884_v43 = vpack.c.bf16 %v1698_v62, %v1698_v62  ;;  %v100_v62 = vld [vmem:[%s1854_s7] sm:$0xff]  ;;  %s1507_s7 = smov [#allocation10]  }
 0x136   :  { %v433_v2 = vmul.f32 %v1700_v63, %v1700_v63  ;;  %v1708_v4 = vpop.f32.mrb[9].mxu1  ;;  %v432_v5 = vmul.f32 %v1706_v3, %v1706_v3  ;;  %v375_v7 = vpop.f32.mrb[10].mxu0  ;;  %v885_v58 = vpack.c.bf16 %v1706_v3, %v1706_v3  ;;  %989 = vperm.xlu0 %1315, %v100_v62   ;;  %s1196_s28 = sshll.u32 %s1507_s7, 4  ;;  %s1197_s28 = int_to_ptr.vmem [resolvable:$true] %s1196_s28 }
 0x137   :  { %v434_v6 = vmul.f32 %v1708_v4, %v1708_v4  ;;  %v416_v8 = vpop.f32.mrb[10].mxu1  ;;  %v435_v9 = vadd.f32 %v431_v1, %v427_v56  ;;  %v376_v11 = vpop.f32.mrb[11].mxu0  ;;  %v94_v56 = vld [vmem:[#allocation7] sm:$0xff]  ;;  %v889_v1 = vsel %vm116_vm0, %v884_v43, 0  ;;  %s1446_s29 = scalar_lea.vmem %s1197_s28, 512  ;;  %p1451_p5 = scmp.lt.s32.totalorder %s1197_s28, %s1197_s28 }
 0x138   :  { %v437_v10 = vadd.f32 %v433_v2, %v429_v57  ;;  %v417_v12 = vpop.f32.mrb[11].mxu1  ;;  %v436_v13 = vadd.f32 %v432_v5, %v428_v60  ;;  %v684_v57 = vpack.c.bf16 %v94_v56, %v94_v56  ;;  %v887_v60 = vpack.c.bf16 %v1708_v4, %v1708_v4  ;;  %p1447_p4 = scmp.ne.s32.totalorder %s1197_s28, %s1446_s29  ;;  %p1452_p6 = scmp.lt.s32.totalorder %s1446_s29, %s1446_s29 }
 0x139   :  { %v438_v14 = vadd.f32 %v434_v6, %v430_v61  ;;  %1334 = vrsqrt.f32 %v435_v9  ;;  %vm441_vm3 = vcmp.eq.f32.partialorder %v435_v9, inf  ;;  %vm443_vm5 = vcmp.eq.f32.partialorder %v435_v9, 0.0  ;;  %v99_v12 = vld [vmem:[#allocation8] sm:$0xff] }
 0x13a   :  { %1336 = vrsqrt.f32 %v437_v10  ;;  %vm448_vm4 = vcmp.eq.f32.partialorder %v436_v13, inf  ;;  %v444_v18 = vand.u32 2147483648, %v435_v9  ;;  %vm450_vm6 = vcmp.eq.f32.partialorder %v436_v13, 0.0  ;;  %p1453_p7 = por %p1452_p6, %p1451_p5 }
 0x13b   :  { %1338 = vrsqrt.f32 %v436_v13  ;;  %v451_v20 = vand.u32 2147483648, %v436_v13  ;;  %vm462_vm7 = vcmp.eq.f32.partialorder %v438_v14, inf  ;;  %vm455_vm8 = vcmp.eq.f32.partialorder %v437_v10, inf }
 0x13c   :  { %1340 = vrsqrt.f32 %v438_v14  ;;  %v458_v25 = vand.u32 2147483648, %v437_v10  ;;  %vm457_vm9 = vcmp.eq.f32.partialorder %v437_v10, 0.0  ;;  %v465_v30 = vand.u32 2147483648, %v438_v14  ;;  %p1454_p8 = pnand %p1453_p7, %p1447_p4 }
 0x13d   :  { %vm464_vm10 = vcmp.eq.f32.partialorder %v438_v14, 0.0  ;;  %v886_v61 = vpack.c.bf16 %v1700_v63, %v1700_v63 }
 0x13f   :  { %v895_v2 = vsel %vm116_vm0, %v886_v61, 0 }
 0x143   :  { %v1335_v15 = vpop.eup %1334 }
 0x144   :  { %v1337_v16 = vpop.eup %1336  ;;  %v440_v17 = vmul.f32 %v1335_v15, %v435_v9 }
 0x145   :  { %v1339_v19 = vpop.eup %1338  ;;  %v454_v21 = vmul.f32 %v1337_v16, %v437_v10 }
 0x146   :  { %v1341_v22 = vpop.eup %1340  ;;  %v447_v23 = vmul.f32 %v1339_v19, %v436_v13  ;;  %v442_v24 = vsel %vm441_vm3, %v435_v9, %v440_v17 }
 0x147   :  { %v461_v26 = vmul.f32 %v1341_v22, %v438_v14  ;;  %v445_v27 = vsel %vm443_vm5, %v444_v18, %v442_v24  ;;  %v456_v28 = vsel %vm455_vm8, %v437_v10, %v454_v21  ;;  %v982_v18 = vpack.c.bf16 %v99_v12, %v99_v12 }
 0x148   :  { %v449_v29 = vsel %vm448_vm4, %v436_v13, %v447_v23  ;;  %v468_v31 = vpack.c.bf16 %v445_v27, %v445_v27  ;;  %v459_v32 = vsel %vm457_vm9, %v458_v25, %v456_v28 }
 0x149   :  { %v452_v33 = vsel %vm450_vm6, %v451_v20, %v449_v29  ;;  %v463_v38 = vsel %vm462_vm7, %v438_v14, %v461_v26  ;;  %v470_v39 = vpack.c.bf16 %v459_v32, %v459_v32 }
 0x14a   :  { %v469_v44 = vpack.c.bf16 %v452_v33, %v452_v33  ;;  %v466_v45 = vsel %vm464_vm10, %v465_v30, %v463_v38  ;;  %v587_v46 = vsel %vm116_vm0, %v468_v31, 0 }
 0x14b   :  { %v471_v47 = vpack.c.bf16 %v466_v45, %v466_v45  ;;  %v593_v50 = vsel %vm116_vm0, %v470_v39, 0 }
 0x14c   :  { %1256 = vmatprep.subr.msk.bf16.mxu0 %vm116_vm0, %v469_v44 }
 0x14d   :  { %1258 = vmatprep.subr.msk.bf16.mxu1 %vm116_vm0, %v471_v47  ;;  %599 = vmatpush1.bf16.msra.mxu0 %v587_v46 }
 0x14e   :  { %642 = vmatpush1.bf16.msra.mxu1 %v593_v50  ;;  %1260 = vmatprep.subr.msk.bf16.mxu0 %vm116_vm0, %v686_v52 }
 0x14f   :  { %1262 = vmatprep.subr.msk.bf16.mxu1 %vm116_vm0, %v688_v55 }
 0x150   :  { %1257 = vmatmul.mubr.msk.bf16.vlgmr.msra.gmra.mrb[12].mxu0 %vm112_vm1, %v467_v53 }
 0x151   :  { %1259 = vmatmul.mubr.msk.bf16.vlgmr.msra.gmra.mrb[12].mxu1 %vm112_vm1, %v467_v53  ;;  %705 = vmatpush1.bf16.msra.mxu0 %v693_v36 }
 0x152   :  { %746 = vmatpush1.bf16.msra.mxu1 %v699_v37  ;;  %1264 = vmatprep.subr.msk.bf16.mxu0 %vm116_vm0, %v787_v34 }
 0x153   :  { %1266 = vmatprep.subr.msk.bf16.mxu1 %vm116_vm0, %v789_v35  ;;  %736 = vmatprep.mubr.bf16.mxu0 %v1506_v0 }
 0x154   :  { %777 = vmatprep.mubr.bf16.mxu1 %v1506_v0 }
 0x158   :  { %1261 = vmatmul.mubr.msk.bf16.vlgmr.msra.gmra.mrb[16].mxu0 %vm112_vm1, %v684_v57 }
 0x159   :  { %1263 = vmatmul.mubr.msk.bf16.vlgmr.msra.gmra.mrb[16].mxu1 %vm112_vm1, %v684_v57  ;;  %803 = vmatpush1.bf16.msra.mxu0 %v791_v59 }
 0x15a   :  { %844 = vmatpush1.bf16.msra.mxu1 %v797_v42  ;;  %1268 = vmatprep.subr.msk.bf16.mxu0 %vm116_vm0, %v885_v58 }
 0x15b   :  { %1270 = vmatprep.subr.msk.bf16.mxu1 %vm116_vm0, %v887_v60  ;;  %834 = vmatprep.mubr.bf16.mxu0 %v1506_v0 }
 0x15c   :  { %875 = vmatprep.mubr.bf16.mxu1 %v1506_v0 }
 0x160   :  { %1265 = vmatmul.mubr.msk.bf16.vlgmr.msra.gmra.mrb[20].mxu0 %vm112_vm1, %v684_v57 }
 0x161   :  { %1267 = vmatmul.mubr.msk.bf16.vlgmr.msra.gmra.mrb[20].mxu1 %vm112_vm1, %v684_v57  ;;  %901 = vmatpush1.bf16.msra.mxu0 %v889_v1 }
 0x162   :  { %942 = vmatpush1.bf16.msra.mxu1 %v895_v2  ;;  %932 = vmatprep.mubr.bf16.mxu0 %v1506_v0 }
 0x163   :  { %973 = vmatprep.mubr.bf16.mxu1 %v1506_v0 }
 0x168   :  { %1269 = vmatmul.mubr.msk.bf16.vlgmr.msra.gmra.mrb[24].mxu0 %vm112_vm1, %v684_v57 }
 0x169   :  { %1271 = vmatmul.mubr.msk.bf16.vlgmr.msra.gmra.mrb[24].mxu1 %vm112_vm1, %v684_v57  ;;  %1027 = vmatprep.mubr.bf16.mxu0 %v1506_v0 }
 0x16a   :  { %1068 = vmatprep.mubr.bf16.mxu1 %v1506_v0 }
 0x223   :  { %v632_v63 = vpop.f32.mrb[12].mxu0 }
 0x224   :  { %v675_v3 = vpop.f32.mrb[12].mxu1  ;;  %v634_v4 = vpop.f32.mrb[13].mxu0 }
 0x225   :  { %v1288_v5 = vpack.c.bf16 %v634_v4, %v632_v63  ;;  %v677_v6 = vpop.f32.mrb[13].mxu1  ;;  %v636_v7 = vpop.f32.mrb[14].mxu0 }
 0x226   :  { %v1289_v8 = vpack.c.bf16 %v677_v6, %v675_v3  ;;  %v983_v9 = vpack.c.bf16 %v636_v7, %v632_v63  ;;  %v679_v10 = vpop.f32.mrb[14].mxu1  ;;  %v638_v11 = vpop.f32.mrb[15].mxu0 }
 0x227   :  { %1133 = vst [vmem:[#allocation10] sm:$0xff] %v1288_v5  ;;  %v985_v13 = vpack.c.bf16 %v679_v10, %v675_v3  ;;  %v984_v14 = vpack.c.bf16 %v638_v11, %v634_v4  ;;  %v1290_v0 = vpack.c.bf16 %v638_v11, %v636_v7  ;;  %v681_v15 = vpop.f32.mrb[15].mxu1 }
 0x228   :  { %1134 = vst [vmem:[#allocation10 + $0x8] sm:$0xff] %v1289_v8  ;;  %v986_v16 = vpack.c.bf16 %v681_v15, %v677_v6  ;;  %v1291_v17 = vpack.c.bf16 %v681_v15, %v679_v10 }
 0x229   :  { %1135 = vst [vmem:[#allocation10 + $0x10] sm:$0xff] %v1290_v0  ;;  %995 = vmatprep.subr.bf16.mxu0 %v984_v14 }
 0x22a   :  { %1136 = vst [vmem:[#allocation10 + $0x18] sm:$0xff] %v1291_v17  ;;  %1036 = vmatprep.subr.bf16.mxu1 %v986_v16  ;;  %996 = vmatpush1.bf16.msra.mxu0 %v983_v9 }
 0x22b   :  { %1037 = vmatpush1.bf16.msra.mxu1 %v985_v13  ;;  %v1782_v19 = vpop.f32.mrb[16].mxu0 }
 0x22c   :  { %v1784_v20 = vpop.f32.mrb[16].mxu1  ;;  %v1786_v21 = vpop.f32.mrb[17].mxu0 }
 0x22d   :  { %1272 = vmatmul.mubr.msk.bf16.vlgmr.msra.gmra.mrb[28].mxu0 %vm493_vm2, %v982_v18  ;;  %v1789_v22 = vpop.f32.mrb[17].mxu1  ;;  %v742_v23 = vpop.f32.mrb[18].mxu0 }
 0x22e   :  { %1273 = vmatmul.mubr.msk.bf16.vlgmr.msra.gmra.mrb[28].mxu1 %vm493_vm2, %v982_v18  ;;  %v783_v24 = vpop.f32.mrb[18].mxu1  ;;  %v743_v25 = vpop.f32.mrb[19].mxu0 }
 0x22f   :  { %v784_v26 = vpop.f32.mrb[19].mxu1 }
 0x233   :  { %v1792_v27 = vpop.f32.mrb[20].mxu0 }
 0x234   :  { %v1794_v28 = vpop.f32.mrb[20].mxu1  ;;  %v1796_v29 = vpop.f32.mrb[21].mxu0 }
 0x235   :  { %v1798_v30 = vpop.f32.mrb[21].mxu1  ;;  %v840_v31 = vpop.f32.mrb[22].mxu0 }
 0x236   :  { %v881_v32 = vpop.f32.mrb[22].mxu1  ;;  %v841_v33 = vpop.f32.mrb[23].mxu0 }
 0x237   :  { %v882_v38 = vpop.f32.mrb[23].mxu1 }
 0x23b   :  { %v934_v39 = vpop.f32.mrb[24].mxu0 }
 0x23c   :  { %v1800_v40 = vpop.f32.mrb[24].mxu1  ;;  %v1802_v41 = vpop.f32.mrb[25].mxu0 }
 0x23d   :  { %v1804_v44 = vpop.f32.mrb[25].mxu1  ;;  %v938_v45 = vpop.f32.mrb[26].mxu0 }
 0x23e   :  { %v979_v46 = vpop.f32.mrb[26].mxu1  ;;  %v939_v47 = vpop.f32.mrb[27].mxu0 }
 0x23f   :  { %v980_v50 = vpop.f32.mrb[27].mxu1 }
 0x240   :  { %1457 = shalt.err (!%p1454_p8)
}
 0x241   :  { %s1458_s13 = scalar_lea.hbm %s1855_s8, 512 }
 0x242   :  { %p1459_p9 = scmp.ne.s32.totalorder %s1855_s8, %s1458_s13  ;;  %p1462_p10 = scmp.lt.u32.totalorder %s1458_s13, %s1855_s8 }
 0x244   :  { %p1464_p11 = pnand %p1462_p10, %p1459_p9 }
 0x246   :  { %1467 = shalt.err (!%p1464_p11)
}
 0x247   :  { %1202 = dma.vmem_to_hbm [thread:$0]  %s1197_s28, 512, %s1855_s8, [#allocation4], %s1502_s2, %s1502_s2, %s1503_s10   ;;  %v990_v51 = vpop.permute.xlu0 %989 }
 0x248   :  { %s1508_s8 = smov [#allocation11]  }
 0x249   :  { %s1208_s18 = sshll.u32 %s1508_s8, 4  ;;  %s1209_s18 = int_to_ptr.vmem [resolvable:$true] %s1208_s18 }
 0x24a   :  { %s1468_s19 = scalar_lea.vmem %s1209_s18, 768  ;;  %p1473_p13 = scmp.lt.s32.totalorder %s1209_s18, %s1209_s18 }
 0x24b   :  { %p1469_p12 = scmp.ne.s32.totalorder %s1209_s18, %s1468_s19  ;;  %p1474_p0 = scmp.lt.s32.totalorder %s1468_s19, %s1468_s19 }
 0x24d   :  { %p1475_p1 = por %p1474_p0, %p1473_p13 }
 0x24f   :  { %p1476_p2 = pnand %p1475_p1, %p1469_p12 }
 0x300   :  { %v1029_v52 = vpop.f32.mrb[28].mxu0 }
 0x301   :  { %v1030_v53 = vadd.f32 %v1029_v52, %v990_v51  ;;  %v1070_v54 = vpop.f32.mrb[28].mxu1  ;;  %v1031_v55 = vpop.f32.mrb[29].mxu0 }
 0x302   :  { %v1071_v34 = vadd.f32 %v1070_v54, %v990_v51  ;;  %v1032_v36 = vadd.f32 %v1031_v55, %v990_v51  ;;  %v1072_v35 = vpop.f32.mrb[29].mxu1  ;;  %v1033_v37 = vpop.f32.mrb[30].mxu0 }
 0x303   :  { %v1274_v56 = vmul.f32 -1.442695, %v1030_v53  ;;  %v1073_v48 = vadd.f32 %v1072_v35, %v990_v51  ;;  %v1074_v57 = vpop.f32.mrb[30].mxu1  ;;  %v1034_v49 = vpop.f32.mrb[31].mxu0 }
 0x304   :  { %v1276_v58 = vmul.f32 -1.442695, %v1071_v34  ;;  %v1275_v59 = vmul.f32 -1.442695, %v1032_v36  ;;  %v1075_v60 = vpop.f32.mrb[31].mxu1 }
 0x305   :  { %1342 = vpow2.f32 %v1274_v56  ;;  %v1277_v42 = vmul.f32 -1.442695, %v1073_v48 }
 0x306   :  { %1344 = vpow2.f32 %v1276_v58 }
 0x307   :  { %1346 = vpow2.f32 %v1275_v59 }
 0x308   :  { %1348 = vpow2.f32 %v1277_v42 }
 0x30f   :  { %v1343_v43 = vpop.eup %1342 }
 0x310   :  { %v1345_v61 = vpop.eup %1344  ;;  %v1089_v1 = vadd.f32 1.0, %v1343_v43 }
 0x311   :  { %v1347_v2 = vpop.eup %1346  ;;  %v1091_v62 = vadd.f32 1.0, %v1345_v61 }
 0x312   :  { %v1349_v63 = vpop.eup %1348  ;;  %1350 = vrcp.f32 %v1089_v1  ;;  %v1090_v3 = vadd.f32 1.0, %v1347_v2 }
 0x313   :  { %1352 = vrcp.f32 %v1091_v62  ;;  %v1092_v4 = vadd.f32 1.0, %v1349_v63 }
 0x314   :  { %1354 = vrcp.f32 %v1090_v3 }
 0x315   :  { %1356 = vrcp.f32 %v1092_v4 }
 0x31c   :  { %v1351_v5 = vpop.eup %1350 }
 0x31d   :  { %v1353_v6 = vpop.eup %1352  ;;  %v1101_v7 = vmul.f32 %v1351_v5, %v1782_v19  ;;  %v1105_v8 = vmul.f32 %v1351_v5, %v1792_v27  ;;  %v1109_v9 = vmul.f32 %v1351_v5, %v934_v39 }
 0x31e   :  { %v1355_v10 = vpop.eup %1354  ;;  %v1103_v11 = vmul.f32 %v1353_v6, %v1784_v20  ;;  %v1107_v12 = vmul.f32 %v1353_v6, %v1794_v28  ;;  %v1111_v13 = vmul.f32 %v1353_v6, %v1800_v40 }
 0x31f   :  { %v1357_v14 = vpop.eup %1356  ;;  %v1102_v0 = vmul.f32 %v1355_v10, %v1786_v21  ;;  %v1106_v15 = vmul.f32 %v1355_v10, %v1796_v29  ;;  %v1110_v16 = vmul.f32 %v1355_v10, %v1802_v41 }
 0x320   :  { %v1104_v17 = vmul.f32 %v1357_v14, %v1789_v22  ;;  %v1108_v18 = vmul.f32 %v1357_v14, %v1798_v30  ;;  %v1112_v19 = vmul.f32 %v1357_v14, %v1804_v44 }
 0x321   :  { %v1292_v20 = vpack.c.bf16 %v1102_v0, %v1101_v7  ;;  %v1294_v23 = vpack.c.bf16 %v1106_v15, %v1105_v8  ;;  %v1296_v24 = vpack.c.bf16 %v1110_v16, %v1109_v9 }
 0x322   :  { %v1293_v25 = vpack.c.bf16 %v1104_v17, %v1103_v11  ;;  %v1295_v26 = vpack.c.bf16 %v1108_v18, %v1107_v12  ;;  %v1297_v27 = vpack.c.bf16 %v1112_v19, %v1111_v13 }
 0x323   :  { %1185 = vst [vmem:[#allocation11] sm:$0xff] %v1292_v20  ;;  %1187 = vst [vmem:[#allocation11 + $0x10] sm:$0xff] %v1294_v23 }
 0x324   :  { %1189 = vst [vmem:[#allocation11 + $0x20] sm:$0xff] %v1296_v24  ;;  %1186 = vst [vmem:[#allocation11 + $0x8] sm:$0xff] %v1293_v25 }
 0x325   :  { %1188 = vst [vmem:[#allocation11 + $0x18] sm:$0xff] %v1295_v26  ;;  %1190 = vst [vmem:[#allocation11 + $0x28] sm:$0xff] %v1297_v27 }
 0x326   :  { %1479 = shalt.err (!%p1476_p2)
}
 0x327   :  { %s1480_s22 = scalar_lea.hbm %s1856_s9, 768 }
 0x328   :  { %p1481_p3 = scmp.ne.s32.totalorder %s1856_s9, %s1480_s22  ;;  %p1484_p4 = scmp.lt.u32.totalorder %s1480_s22, %s1856_s9 }
 0x32a   :  { %p1486_p5 = pnand %p1484_p4, %p1481_p3 }
 0x32c   :  { %1489 = shalt.err (!%p1486_p5)
}
 0x32d   :  { %1214 = dma.vmem_to_hbm [thread:$0]  %s1209_s18, 768, %s1856_s9, [#allocation12], %s1502_s2, %s1502_s2, %s1503_s10  }
 0x32e   :  { %1496 = dma.done.wait [#allocation4], 512  }
 0x32f   :  { %1497 = vsyncadd [#allocation4], 4294966784 }
 0x330   :  { %1498 = dma.done.wait [#allocation12], 768  }
 0x331   :  { %1499 = vsyncadd [#allocation12], 4294966528 }
 0x332   :  { %1221 = vsyncpa [#allocation3], 1 }
 0x333   :  { %1222 = vsyncpa [#allocation6], 1 }
 0x334   :  { %1223 = vsyncpa [#allocation9], 1 }
 0x335   :  { %1224 = vsyncpa [#allocation4], 1 }
 0x336   :  { %1225 = vsyncpa [#allocation12], 1 }

</bundles_post_ra>
